<compile_context>
chip_gen: v6e
topology: v6e:2x2x1
jax: 0.10.0
libtpu: 0.0.40
codegen_flags: <defaults>
</compile_context>

<pallas_src>
import functools

import jax
import jax.numpy as jnp
from jax.experimental import pallas as pl
from jax.experimental.pallas import tpu as pltpu

N_EMBED = 64
HIDDEN = 4 * N_EMBED          # 256
WIDE_IN = 2 * N_EMBED         # 128 (lane-dense packed width)
WIDE_HID = 2 * HIDDEN         # 512


def _ffn_kernel(x_ref, w1_ref, b1_ref, w2_ref, b2_ref, o_ref, *, hidden_dtype):
    # x_ref:  (tile_rows, 128)  -- each lane-dense row packs two logical 64-wide rows
    # w1_ref: (128, 512) block-diag(W1, W1)     b1_ref: (1, 512) = [b1 | b1]
    # w2_ref: (512, 128) block-diag(W2, W2)     b2_ref: (1, 128) = [b2 | b2]
    x = x_ref[...]  # MXU consumes bf16/f32 natively; accumulation in f32.

    h = jnp.dot(x, w1_ref[...], preferred_element_type=jnp.float32)
    # Fused bias + ReLU, immediately narrowed to the weight dtype so the (tile, 512)
    # hidden temp round-trips VMEM at half width on the bf16 path (v6e/v7x VALU/vst).
    h = jnp.maximum(h + b1_ref[...].astype(jnp.float32), 0.0).astype(hidden_dtype)

    y = jnp.dot(h, w2_ref[...], preferred_element_type=jnp.float32)
    o_ref[...] = (y + b2_ref[...].astype(jnp.float32)).astype(o_ref.dtype)


def _block_diag2(w):
    """[[w, 0], [0, w]] -- lets a lane-packed pair of rows go through the same MLP."""
    z = jnp.zeros_like(w)
    top = jnp.concatenate([w, z], axis=1)
    bot = jnp.concatenate([z, w], axis=1)
    return jnp.concatenate([top, bot], axis=0)


def prepare_params(w1, b1, w2, b2, compute_dtype=jnp.bfloat16):
    """One-time (hoisted) widening/casting of the weights for the fused kernel.

    Call once and reuse the result across forward calls; this keeps the block-diagonal
    construction and concatenations out of the per-call XLA prologue.
    """
    if compute_dtype is not None:
        w1, b1, w2, b2 = (t.astype(compute_dtype) for t in (w1, b1, w2, b2))
    w1_blk = _block_diag2(w1)                                  # (128, 512)
    w2_blk = _block_diag2(w2)                                  # (512, 128)
    b1_wide = jnp.concatenate([b1, b1]).reshape(1, WIDE_HID)   # (1, 512)
    b2_wide = jnp.concatenate([b2, b2]).reshape(1, WIDE_IN)    # (1, 128)
    return (w1_blk, b1_wide, w2_blk, b2_wide)


def _round_up16(n):
    return ((n + 15) // 16) * 16


def feedforward_pallas(x, prepared, *, tile_m=4096):
    """x: (..., n_embed) -> (..., n_embed). Fused MLP in a single Pallas kernel.

    prepared: output of prepare_params() (pre-widened, pre-cast weights).
    tile_m:   target logical rows per grid step (multiple of 32).
    """
    w1_blk, b1_wide, w2_blk, b2_wide = prepared
    compute_dtype = w1_blk.dtype
    orig_shape = x.shape
    orig_dtype = x.dtype
    assert orig_shape[-1] == N_EMBED
    assert tile_m % 32 == 0

    x2d = x.astype(compute_dtype).reshape(-1, N_EMBED)
    M = x2d.shape[0]

    # Lane-dense packing: row-major (M, 64) is bit-identical to (M/2, 128).
    pad = (-M) % 2                       # at most one row, only if M is odd
    if pad:
        x2d = jnp.pad(x2d, ((0, pad), (0, 0)))
    Mp = M + pad
    Mw = Mp // 2
    x_wide = x2d.reshape(Mw, WIDE_IN)    # free, layout-preserving reshape

    # --- Tile selection -------------------------------------------------------------
    # Big tiles (default 2048 packed rows) to amortize per-step overhead; tile_rows is a
    # multiple of 16 (bf16 native sublane packing) unless it is the full array extent;
    # the grid step count is kept even (>=2) so v7x's two TensorCores stay balanced.
    target = _round_up16(max(16, tile_m // 2))
    if Mw < 32:
        tile_rows = Mw                                  # full extent, single step
    else:
        tile_cap = min(target, _round_up16(pl.cdiv(Mw, 2)))
        steps = pl.cdiv(Mw, tile_cap)
        if steps % 2:
            steps += 1                                  # even step count for megacore
        tile_rows = _round_up16(pl.cdiv(Mw, steps))
    grid = (pl.cdiv(Mw, tile_rows),)                    # ragged trailing block is fine

    # --- Cost estimate (actually-issued FLOPs: block-diag zeros double the logical count)
    w_bytes = jnp.dtype(compute_dtype).itemsize
    out_bytes = jnp.dtype(orig_dtype).itemsize
    cost = pl.CostEstimate(
        flops=4 * Mw * WIDE_IN * WIDE_HID,
        transcendentals=0,
        bytes_accessed=(Mw * WIDE_IN * (w_bytes + out_bytes)
                        + (w1_blk.size + b1_wide.size
                           + w2_blk.size + b2_wide.size) * w_bytes),
    )

    kernel = functools.partial(_ffn_kernel, hidden_dtype=w2_blk.dtype)

    out_wide = pl.pallas_call(
        kernel,
        out_shape=jax.ShapeDtypeStruct((Mw, WIDE_IN), orig_dtype),
        grid_spec=pltpu.PrefetchScalarGridSpec(
            num_scalar_prefetch=0,
            grid=grid,
            in_specs=[
                pl.BlockSpec((tile_rows, WIDE_IN), lambda i: (i, 0)),   # x tile
                pl.BlockSpec((WIDE_IN, WIDE_HID), lambda i: (0, 0)),    # W1 (resident)
                pl.BlockSpec((1, WIDE_HID), lambda i: (0, 0)),          # b1
                pl.BlockSpec((WIDE_HID, WIDE_IN), lambda i: (0, 0)),    # W2 (resident)
                pl.BlockSpec((1, WIDE_IN), lambda i: (0, 0)),           # b2
            ],
            out_specs=pl.BlockSpec((tile_rows, WIDE_IN), lambda i: (i, 0)),
        ),
        compiler_params=pltpu.CompilerParams(
            dimension_semantics=("parallel",),
            vmem_limit_bytes=48 * 1024 * 1024,   # explicit: v5e's scoped default is 16 MiB
        ),
        cost_estimate=cost,
    )(x_wide, w1_blk, b1_wide, w2_blk, b2_wide)

    out = out_wide.reshape(Mp, N_EMBED)
    if pad:
        out = out[:M]
    return out.reshape(orig_shape)


def init_params(key):
    """Deterministic init mimicking nn.Linear (uniform(-1/sqrt(fan_in), 1/sqrt(fan_in)))."""
    k1, k2, k3, k4 = jax.random.split(key, 4)
    bound1 = 1.0 / jnp.sqrt(N_EMBED)
    bound2 = 1.0 / jnp.sqrt(HIDDEN)
    # Stored as (in_features, out_features) so the kernel does x @ W (== PyTorch x @ W.T).
    w1 = jax.random.uniform(k1, (N_EMBED, HIDDEN), jnp.float32, -bound1, bound1)
    b1 = jax.random.uniform(k2, (HIDDEN,), jnp.float32, -bound1, bound1)
    w2 = jax.random.uniform(k3, (HIDDEN, N_EMBED), jnp.float32, -bound2, bound2)
    b2 = jax.random.uniform(k4, (N_EMBED,), jnp.float32, -bound2, bound2)
    return w1, b1, w2, b2


if __name__ == "__main__":
    key = jax.random.PRNGKey(0)
    kx, kx2, kp = jax.random.split(key, 3)

    w1, b1, w2, b2 = init_params(kp)

    # Hoisted weight preparation (done once, reused across calls).
    params_bf16 = prepare_params(w1, b1, w2, b2)                        # default fast path
    params_f32 = prepare_params(w1, b1, w2, b2, compute_dtype=jnp.float32)

    fwd = jax.jit(feedforward_pallas)

    # Small decode-style batch: B=2, T=8 -> M=16 rows, single grid step.
    x = jax.random.normal(kx, (2, 8, N_EMBED), jnp.float32)
    ref = jnp.maximum(x @ w1 + b1, 0.0) @ w2 + b2

    out_bf16 = jax.block_until_ready(fwd(x, params_bf16))
    assert out_bf16.shape == x.shape
    assert jnp.allclose(out_bf16, ref, atol=3e-2, rtol=3e-2)

    out_f32 = jax.block_until_ready(fwd(x, params_f32))
    assert out_f32.shape == x.shape
    assert jnp.allclose(out_f32, ref, atol=2e-4, rtol=2e-4)

    # Larger ragged batch: odd row count (M=1011) exercises the 2-row packing pad and a
    # multi-step, even (megacore-friendly) grid with a ragged trailing block.
    x2 = jax.random.normal(kx2, (3, 337, N_EMBED), jnp.float32)
    ref2 = jnp.maximum(x2 @ w1 + b1, 0.0) @ w2 + b2
    out2 = jax.block_until_ready(fwd(x2, params_bf16))
    assert out2.shape == x2.shape
    assert jnp.allclose(out2, ref2, atol=3e-2, rtol=3e-2)

    print("KERNEL_OK")
</pallas_src>

<mosaic_0001>
module attributes {stable_mosaic.version = 11 : i64} {
  func.func @_ffn_kernel(%arg0: i32, %arg1: memref<8x128xbf16, #tpu.memory_space<vmem>>, %arg2: memref<128x512xbf16, #tpu.memory_space<vmem>>, %arg3: memref<1x512xbf16, #tpu.memory_space<vmem>>, %arg4: memref<512x128xbf16, #tpu.memory_space<vmem>>, %arg5: memref<1x128xbf16, #tpu.memory_space<vmem>>, %arg6: memref<8x128xf32, #tpu.memory_space<vmem>>) attributes {dimension_semantics = [#tpu.dimension_semantics<parallel>], iteration_bounds = array<i64: 1>, scalar_prefetch = 0 : i64, scratch_operands = 0 : i64, tpu.core_type = #tpu.core_type<tc>, window_params = [{transform_indices = @transform_0, window_bounds = array<i64: 8, 128>}, {pipeline_mode = #tpu.pipeline_mode<synchronous>, transform_indices = @transform_1, window_bounds = array<i64: 128, 512>}, {pipeline_mode = #tpu.pipeline_mode<synchronous>, transform_indices = @transform_2, window_bounds = array<i64: 1, 512>}, {pipeline_mode = #tpu.pipeline_mode<synchronous>, transform_indices = @transform_3, window_bounds = array<i64: 512, 128>}, {pipeline_mode = #tpu.pipeline_mode<synchronous>, transform_indices = @transform_4, window_bounds = array<i64: 1, 128>}, {transform_indices = @transform_5, window_bounds = array<i64: 8, 128>}]} {
    %c0 = arith.constant 0 : index
    %c0_0 = arith.constant 0 : index
    %0 = vector.load %arg1[%c0, %c0_0] : memref<8x128xbf16, #tpu.memory_space<vmem>>, vector<8x128xbf16>
    %c0_1 = arith.constant 0 : index
    %c0_2 = arith.constant 0 : index
    %1 = vector.load %arg2[%c0_1, %c0_2] : memref<128x512xbf16, #tpu.memory_space<vmem>>, vector<128x512xbf16>
    %cst = arith.constant dense<0.000000e+00> : vector<8x512xf32>
    %2 = tpu.matmul %0, %1, %cst {dimension_numbers = #tpu.dot_dimension_numbers<[1], [0], [0], [1], [0, 0, 1, 1], [], []>} : vector<8x128xbf16>, vector<128x512xbf16>, vector<8x512xf32> -> vector<8x512xf32>
    %c0_3 = arith.constant 0 : index
    %c0_4 = arith.constant 0 : index
    %3 = vector.load %arg3[%c0_3, %c0_4] : memref<1x512xbf16, #tpu.memory_space<vmem>>, vector<1x512xbf16>
    %4 = arith.extf %3 : vector<1x512xbf16> to vector<1x512xf32>
    %5 = vector.broadcast %4 : vector<1x512xf32> to vector<8x512xf32>
    %6 = arith.addf %2, %5 : vector<8x512xf32>
    %cst_5 = arith.constant 0.000000e+00 : f32
    %7 = vector.broadcast %cst_5 : f32 to vector<8x512xf32>
    %8 = arith.maximumf %6, %7 : vector<8x512xf32>
    %9 = arith.truncf %8 : vector<8x512xf32> to vector<8x512xbf16>
    %c0_6 = arith.constant 0 : index
    %c0_7 = arith.constant 0 : index
    %10 = vector.load %arg4[%c0_6, %c0_7] : memref<512x128xbf16, #tpu.memory_space<vmem>>, vector<512x128xbf16>
    %cst_8 = arith.constant dense<0.000000e+00> : vector<8x128xf32>
    %11 = tpu.matmul %9, %10, %cst_8 {dimension_numbers = #tpu.dot_dimension_numbers<[1], [0], [0], [1], [0, 0, 1, 1], [], []>} : vector<8x512xbf16>, vector<512x128xbf16>, vector<8x128xf32> -> vector<8x128xf32>
    %c0_9 = arith.constant 0 : index
    %c0_10 = arith.constant 0 : index
    %12 = vector.load %arg5[%c0_9, %c0_10] : memref<1x128xbf16, #tpu.memory_space<vmem>>, vector<1x128xbf16>
    %13 = arith.extf %12 : vector<1x128xbf16> to vector<1x128xf32>
    %14 = vector.broadcast %13 : vector<1x128xf32> to vector<8x128xf32>
    %15 = arith.addf %11, %14 : vector<8x128xf32>
    %c0_11 = arith.constant 0 : index
    %c0_12 = arith.constant 0 : index
    %16 = vector.load %arg6[%c0_11, %c0_12] : memref<8x128xf32, #tpu.memory_space<vmem>>, vector<8x128xf32>
    tpu.vector_store %arg6[%c0_11, %c0_12], %15 {strides = array<i32>} : memref<8x128xf32, #tpu.memory_space<vmem>>, vector<8x128xf32>,
    return
  }
  func.func @transform_0(%arg0: i32) -> (i32, i32) {
    %c0_i32 = arith.constant 0 : i32
    %c0_i32_0 = arith.constant 0 : i32
    return %arg0, %c0_i32 : i32, i32
  }
  func.func @transform_1(%arg0: i32) -> (i32, i32) {
    %c0_i32 = arith.constant 0 : i32
    %c0_i32_0 = arith.constant 0 : i32
    %c0_i32_1 = arith.constant 0 : i32
    return %c0_i32, %c0_i32_0 : i32, i32
  }
  func.func @transform_2(%arg0: i32) -> (i32, i32) {
    %c0_i32 = arith.constant 0 : i32
    %c0_i32_0 = arith.constant 0 : i32
    %c0_i32_1 = arith.constant 0 : i32
    return %c0_i32, %c0_i32_0 : i32, i32
  }
  func.func @transform_3(%arg0: i32) -> (i32, i32) {
    %c0_i32 = arith.constant 0 : i32
    %c0_i32_0 = arith.constant 0 : i32
    %c0_i32_1 = arith.constant 0 : i32
    return %c0_i32, %c0_i32_0 : i32, i32
  }
  func.func @transform_4(%arg0: i32) -> (i32, i32) {
    %c0_i32 = arith.constant 0 : i32
    %c0_i32_0 = arith.constant 0 : i32
    %c0_i32_1 = arith.constant 0 : i32
    return %c0_i32, %c0_i32_0 : i32, i32
  }
  func.func @transform_5(%arg0: i32) -> (i32, i32) {
    %c0_i32 = arith.constant 0 : i32
    %c0_i32_0 = arith.constant 0 : i32
    return %arg0, %c0_i32 : i32, i32
  }
}

</mosaic_0001>

<bundles_post_ra>
// kernel: feedforward_pallas.1
= control target key start
LH: loop header
LB: loop body
LE: loop exit
PB: predicated region body
PF: predicated region fallthrough
CT: control target
= control target key end

     0   :  { %10 = vsyncpa [#allocation3], 0  ;;  %s1014_s0 = inlined_call_operand.vmem [shape: bf16[8,128], index: 0, kind: input, shape index: {}]   ;;  %s1015_s1 = inlined_call_operand.hbm [shape: bf16[128,512], index: 1, kind: input, shape index: {}]   ;;  %s1016_s2 = inlined_call_operand.vmem [shape: bf16[1,512], index: 2, kind: input, shape index: {}]   ;;  %s1017_s3 = inlined_call_operand.hbm [shape: bf16[512,128], index: 3, kind: input, shape index: {}]   ;;  %s1018_s4 = inlined_call_operand.vmem [shape: bf16[1,128], index: 4, kind: input, shape index: {}]   ;;  %s1019_s5 = inlined_call_operand.vmem [shape: f32[8,128], index: 5, kind: output, shape index: {}]  }
   0x1   :  { %11 = vsyncpa [#allocation5], 0  ;;  %s959_s18 = smov [#allocation2]  }
   0x2   :  { %s19_s19 = sshll.u32 %s959_s18, 4  ;;  %s20_s19 = int_to_ptr.vmem [resolvable:$true] %s19_s19 }
   0x3   :  { %s923_s20 = scalar_lea.vmem %s20_s19, 4096  ;;  %p928_p1 = scmp.lt.s32.totalorder %s20_s19, %s20_s19 }
   0x4   :  { %p924_p0 = scmp.ne.s32.totalorder %s20_s19, %s923_s20  ;;  %p929_p2 = scmp.lt.s32.totalorder %s923_s20, %s923_s20 }
   0x6   :  { %p930_p3 = por %p929_p2, %p928_p1 }
   0x8   :  { %p931_p4 = pnand %p930_p3, %p924_p0 }
   0xa   :  { %934 = shalt.err (!%p931_p4)
}
   0xb   :  { %s960_s21 = smov 256   ;;  %s961_s22 = smov 16  }
   0xc   :  { %25 = dma.hbm_to_vmem [thread:$0]  %s1015_s1, 4096, %s20_s19, [#allocation3], %s960_s21, %s960_s21, %s961_s22  }
   0xd   :  { %s962_s25 = smov [#allocation4]  }
   0xe   :  { %s33_s26 = sshll.u32 %s962_s25, 4  ;;  %s34_s26 = int_to_ptr.vmem [resolvable:$true] %s33_s26 }
   0xf   :  { %s943_s27 = scalar_lea.vmem %s34_s26, 4096  ;;  %p948_p6 = scmp.lt.s32.totalorder %s34_s26, %s34_s26 }
  0x10   :  { %p944_p5 = scmp.ne.s32.totalorder %s34_s26, %s943_s27  ;;  %p949_p7 = scmp.lt.s32.totalorder %s943_s27, %s943_s27 }
  0x12   :  { %p950_p8 = por %p949_p7, %p948_p6 }
  0x14   :  { %p951_p9 = pnand %p950_p8, %p944_p5 }
  0x16   :  { %954 = shalt.err (!%p951_p9)
}
  0x17   :  { %s963_s28 = smov 64   ;;  %s964_s29 = smov 4  }
  0x18   :  { %39 = dma.hbm_to_vmem [thread:$0]  %s1017_s3, 4096, %s34_s26, [#allocation5], %s963_s28, %s963_s28, %s964_s29  }
  0x19   :  { %955 = dma.done.wait [#allocation3], 4096  }
  0x1a   :  { %956 = vsyncadd [#allocation3], 4294963200 }
  0x1b   :  { %957 = dma.done.wait [#allocation5], 4096  }
  0x1c   :  { %958 = vsyncadd [#allocation5], 4294963200  ;;  %v965_v0 = vmov 0   ;;  %v835_v1 = vld [vmem:[#allocation2 + $0xe4] ss:$16 sps:$4 sm:$0xff]   ;;  %v883_v33 = vld [vmem:[#allocation4 + $0x78] sm:$0xff]  }
  0x1d   :  { %313 = vmatprep.mubr.bf16.mxu0 %v965_v0  ;;  %354 = vmatprep.mubr.bf16.mxu1 %v965_v0  ;;  %v837_v2 = vld [vmem:[#allocation2 + $0xec] ss:$16 sps:$4 sm:$0xff]   ;;  %v839_v3 = vld [vmem:[#allocation2 + $0xe0] ss:$16 sps:$4 sm:$0xff]   ;;  %v840_v4 = vld [vmem:[#allocation2 + $0xe8] ss:$16 sps:$4 sm:$0xff]  }
  0x1e   :  { %281 = vmatprep.subr.bf16.mxu0 %v835_v1  ;;  %322 = vmatprep.subr.bf16.mxu1 %v837_v2  ;;  %v841_v5 = vld [vmem:[#allocation2 + $0xc4] ss:$16 sps:$4 sm:$0xff]   ;;  %v843_v6 = vld [vmem:[#allocation2 + $0xcc] ss:$16 sps:$4 sm:$0xff]   ;;  %v845_v7 = vld [vmem:[#allocation2 + $0xc0] ss:$16 sps:$4 sm:$0xff]   ;;  %v85_v2 = vlaneseq }
  0x1f   :  { %282 = vmatpush1.bf16.msra.mxu0 %v839_v3  ;;  %323 = vmatpush1.bf16.msra.mxu1 %v840_v4  ;;  %v846_v8 = vld [vmem:[#allocation2 + $0xc8] ss:$16 sps:$4 sm:$0xff]   ;;  %v847_v9 = vld [vmem:[#allocation2 + $0xa4] ss:$16 sps:$4 sm:$0xff]   ;;  %v849_v10 = vld [vmem:[#allocation2 + $0xac] ss:$16 sps:$4 sm:$0xff]  }
  0x20   :  { %283 = vmatprep.subr.bf16.mxu0 %v841_v5  ;;  %324 = vmatprep.subr.bf16.mxu1 %v843_v6  ;;  %v851_v11 = vld [vmem:[#allocation2 + $0xa0] ss:$16 sps:$4 sm:$0xff]   ;;  %v852_v12 = vld [vmem:[#allocation2 + $0xa8] ss:$16 sps:$4 sm:$0xff]   ;;  %v853_v13 = vld [vmem:[#allocation2 + $0x84] ss:$16 sps:$4 sm:$0xff]  }
  0x21   :  { %v855_v14 = vld [vmem:[#allocation2 + $0x8c] ss:$16 sps:$4 sm:$0xff]   ;;  %v857_v15 = vld [vmem:[#allocation2 + $0x80] ss:$16 sps:$4 sm:$0xff]   ;;  %v858_v16 = vld [vmem:[#allocation2 + $0x88] ss:$16 sps:$4 sm:$0xff]  }
  0x22   :  { %v859_v17 = vld [vmem:[#allocation2 + $0x64] ss:$16 sps:$4 sm:$0xff]   ;;  %v861_v18 = vld [vmem:[#allocation2 + $0x6c] ss:$16 sps:$4 sm:$0xff]   ;;  %v863_v19 = vld [vmem:[#allocation2 + $0x60] ss:$16 sps:$4 sm:$0xff]  }
  0x23   :  { %284 = vmatpush1.bf16.msra.mxu0 %v845_v7  ;;  %325 = vmatpush1.bf16.msra.mxu1 %v846_v8  ;;  %v864_v20 = vld [vmem:[#allocation2 + $0x68] ss:$16 sps:$4 sm:$0xff]   ;;  %v865_v21 = vld [vmem:[#allocation2 + $0x44] ss:$16 sps:$4 sm:$0xff]   ;;  %v867_v22 = vld [vmem:[#allocation2 + $0x4c] ss:$16 sps:$4 sm:$0xff]  }
  0x24   :  { %285 = vmatprep.subr.bf16.mxu0 %v847_v9  ;;  %326 = vmatprep.subr.bf16.mxu1 %v849_v10  ;;  %v869_v23 = vld [vmem:[#allocation2 + $0x40] ss:$16 sps:$4 sm:$0xff]   ;;  %v870_v24 = vld [vmem:[#allocation2 + $0x48] ss:$16 sps:$4 sm:$0xff]   ;;  %v871_v25 = vld [vmem:[#allocation2 + $0x24] ss:$16 sps:$4 sm:$0xff]  }
  0x25   :  { %v873_v26 = vld [vmem:[#allocation2 + $0x2c] ss:$16 sps:$4 sm:$0xff]   ;;  %v875_v27 = vld [vmem:[#allocation2 + $0x20] ss:$16 sps:$4 sm:$0xff]   ;;  %v876_v28 = vld [vmem:[#allocation2 + $0x28] ss:$16 sps:$4 sm:$0xff]  }
  0x26   :  { %v877_v29 = vld [vmem:[#allocation2 + $0x4] ss:$16 sps:$4 sm:$0xff]   ;;  %v879_v30 = vld [vmem:[#allocation2 + $0xc] ss:$16 sps:$4 sm:$0xff]   ;;  %v881_v31 = vld [vmem:[#allocation2] ss:$16 sps:$4 sm:$0xff]  }
  0x27   :  { %286 = vmatpush1.bf16.msra.mxu0 %v851_v11  ;;  %327 = vmatpush1.bf16.msra.mxu1 %v852_v12  ;;  %v882_v32 = vld [vmem:[#allocation2 + $0x8] ss:$16 sps:$4 sm:$0xff]   ;;  %v49_v35 = vld [vmem:[%s1014_s0] sm:$0xf]  ;;  %v887_v38 = vld [vmem:[#allocation4 + $0x70] sm:$0xff]   ;;  %v86_v3 = vshrl.u32 %v85_v2, 7 }
  0x28   :  { %287 = vmatprep.subr.bf16.mxu0 %v853_v13  ;;  %328 = vmatprep.subr.bf16.mxu1 %v855_v14  ;;  %v884_v34 = vld [vmem:[#allocation4 + $0xf8] sm:$0xff]   ;;  %v888_v39 = vld [vmem:[#allocation4 + $0xf0] sm:$0xff]   ;;  %v891_v42 = vld [vmem:[#allocation4 + $0x68] sm:$0xff]  }
  0x29   :  { %v885_v36 = vld [vmem:[#allocation4 + $0x38] sm:$0xff]   ;;  %v889_v40 = vld [vmem:[#allocation4 + $0x30] sm:$0xff]   ;;  %v892_v43 = vld [vmem:[#allocation4 + $0xe8] sm:$0xff]   ;;  %v87_v6 = vsub.s32 0, %v86_v3  ;;  %v95_v7 = vsub.s32 4, %v86_v3  ;;  %v91_v8 = vsub.s32 2, %v86_v3 }
  0x2a   :  { %v886_v37 = vld [vmem:[#allocation4 + $0xb8] sm:$0xff]   ;;  %v890_v41 = vld [vmem:[#allocation4 + $0xb0] sm:$0xff]   ;;  %v893_v44 = vld [vmem:[#allocation4 + $0x28] sm:$0xff]   ;;  %v99_v9 = vsub.s32 6, %v86_v3 }
  0x2b   :  { %288 = vmatpush1.bf16.msra.mxu0 %v857_v15  ;;  %329 = vmatpush1.bf16.msra.mxu1 %v858_v16  ;;  %v894_v45 = vld [vmem:[#allocation4 + $0xa8] sm:$0xff]   ;;  %v895_v46 = vld [vmem:[#allocation4 + $0x60] sm:$0xff]   ;;  %v899_v50 = vld [vmem:[#allocation4 + $0x58] sm:$0xff]  }
  0x2c   :  { %289 = vmatprep.subr.bf16.mxu0 %v859_v17  ;;  %330 = vmatprep.subr.bf16.mxu1 %v861_v18  ;;  %v896_v47 = vld [vmem:[#allocation4 + $0xe0] sm:$0xff]   ;;  %v900_v51 = vld [vmem:[#allocation4 + $0xd8] sm:$0xff]   ;;  %v903_v54 = vld [vmem:[#allocation4 + $0x50] sm:$0xff]  }
  0x2d   :  { %v897_v48 = vld [vmem:[#allocation4 + $0x20] sm:$0xff]   ;;  %v901_v52 = vld [vmem:[#allocation4 + $0x18] sm:$0xff]   ;;  %v904_v55 = vld [vmem:[#allocation4 + $0xd0] sm:$0xff]  }
  0x2e   :  { %v898_v49 = vld [vmem:[#allocation4 + $0xa0] sm:$0xff]   ;;  %v902_v53 = vld [vmem:[#allocation4 + $0x98] sm:$0xff]   ;;  %v905_v56 = vld [vmem:[#allocation4 + $0x10] sm:$0xff]  }
  0x2f   :  { %290 = vmatpush1.bf16.msra.mxu0 %v863_v19  ;;  %331 = vmatpush1.bf16.msra.mxu1 %v864_v20  ;;  %v906_v57 = vld [vmem:[#allocation4 + $0x90] sm:$0xff]   ;;  %v907_v58 = vld [vmem:[#allocation4 + $0x48] sm:$0xff]   ;;  %v911_v62 = vld [vmem:[#allocation4 + $0x40] sm:$0xff]  }
  0x30   :  { %291 = vmatprep.subr.bf16.mxu0 %v865_v21  ;;  %332 = vmatprep.subr.bf16.mxu1 %v867_v22  ;;  %v908_v59 = vld [vmem:[#allocation4 + $0xc8] sm:$0xff]   ;;  %v912_v63 = vld [vmem:[#allocation4 + $0xc0] sm:$0xff]  }
  0x31   :  { %v909_v60 = vld [vmem:[#allocation4 + $0x8] sm:$0xff]   ;;  %v913_v0 = vld [vmem:[#allocation4] sm:$0xff]  }
  0x32   :  { %v910_v61 = vld [vmem:[#allocation4 + $0x88] sm:$0xff]   ;;  %v914_v1 = vld [vmem:[#allocation4 + $0x80] sm:$0xff]  }
  0x33   :  { %292 = vmatpush1.bf16.msra.mxu0 %v869_v23  ;;  %333 = vmatpush1.bf16.msra.mxu1 %v870_v24  ;;  %v82_v4 = vld [vmem:[%s1016_s2] sm:$0xf] }
  0x34   :  { %293 = vmatprep.subr.bf16.mxu0 %v871_v25  ;;  %334 = vmatprep.subr.bf16.mxu1 %v873_v26  ;;  %v83_v5 = vunpack.c.l.bf16 %v82_v4 }
  0x36   :  { %v88_v10 = vrot.slane %v83_v5, %v87_v6  ;;  %v96_v11 = vrot.slane %v83_v5, %v95_v7  ;;  %v92_v12 = vrot.slane %v83_v5, %v91_v8  ;;  %v100_v13 = vrot.slane %v83_v5, %v99_v9 }
  0x37   :  { %294 = vmatpush1.bf16.msra.mxu0 %v875_v27  ;;  %335 = vmatpush1.bf16.msra.mxu1 %v876_v28 }
  0x38   :  { %295 = vmatprep.subr.bf16.mxu0 %v877_v29  ;;  %336 = vmatprep.subr.bf16.mxu1 %v879_v30  ;;  %v108_v14 = vrot.slane %v88_v10, %v87_v6  ;;  %v116_v15 = vrot.slane %v96_v11, %v87_v6  ;;  %v112_v16 = vrot.slane %v92_v12, %v87_v6 }
  0x39   :  { %v120_v17 = vrot.slane %v100_v13, %v87_v6 }
  0x3b   :  { %296 = vmatpush1.bf16.msra.mxu0 %v881_v31  ;;  %337 = vmatpush1.bf16.msra.mxu1 %v882_v32 }
  0x3c   :  { %784 = vmatprep.subr.bf16.mxu0 %v883_v33  ;;  %806 = vmatprep.subr.bf16.mxu1 %v884_v34 }
  0x3e   :  { %314 = vmatmul.mubr.bf16.vlgmr.msra.gmra.mxu0 %v49_v35  ;;  %355 = vmatmul.mubr.bf16.vlgmr.msra.gmra.mxu1 %v49_v35 }
  0x3f   :  { %785 = vmatpush3.bf16.msra.mxu0 %v885_v36  ;;  %807 = vmatpush3.bf16.msra.mxu1 %v886_v37 }
  0x40   :  { %786 = vmatprep.subr.bf16.mxu0 %v887_v38  ;;  %808 = vmatprep.subr.bf16.mxu1 %v888_v39  ;;  %v435_v38 = vld [vmem:[%s1018_s4] sm:$0x1] }
  0x41   :  { %v436_v39 = vunpack.c.l.bf16 %v435_v38 }
  0x43   :  { %787 = vmatpush3.bf16.msra.mxu0 %v889_v40  ;;  %809 = vmatpush3.bf16.msra.mxu1 %v890_v41 }
  0x44   :  { %788 = vmatprep.subr.bf16.mxu0 %v891_v42  ;;  %810 = vmatprep.subr.bf16.mxu1 %v892_v43  ;;  %v440_v42 = vrot.slane %v436_v39, %v87_v6 }
  0x47   :  { %789 = vmatpush3.bf16.msra.mxu0 %v893_v44  ;;  %811 = vmatpush3.bf16.msra.mxu1 %v894_v45 }
  0x48   :  { %790 = vmatprep.subr.bf16.mxu0 %v895_v46  ;;  %812 = vmatprep.subr.bf16.mxu1 %v896_v47 }
  0x4b   :  { %791 = vmatpush3.bf16.msra.mxu0 %v897_v48  ;;  %813 = vmatpush3.bf16.msra.mxu1 %v898_v49 }
  0x4c   :  { %792 = vmatprep.subr.bf16.mxu0 %v899_v50  ;;  %814 = vmatprep.subr.bf16.mxu1 %v900_v51 }
  0x4f   :  { %793 = vmatpush3.bf16.msra.mxu0 %v901_v52  ;;  %815 = vmatpush3.bf16.msra.mxu1 %v902_v53 }
  0x50   :  { %794 = vmatprep.subr.bf16.mxu0 %v903_v54  ;;  %816 = vmatprep.subr.bf16.mxu1 %v904_v55 }
  0x53   :  { %795 = vmatpush3.bf16.msra.mxu0 %v905_v56  ;;  %817 = vmatpush3.bf16.msra.mxu1 %v906_v57 }
  0x54   :  { %796 = vmatprep.subr.bf16.mxu0 %v907_v58  ;;  %818 = vmatprep.subr.bf16.mxu1 %v908_v59 }
  0x57   :  { %797 = vmatpush3.bf16.msra.mxu0 %v909_v60  ;;  %819 = vmatpush3.bf16.msra.mxu1 %v910_v61 }
  0x58   :  { %798 = vmatprep.subr.bf16.mxu0 %v911_v62  ;;  %820 = vmatprep.subr.bf16.mxu1 %v912_v63 }
  0x5b   :  { %799 = vmatpush3.bf16.msra.mxu0 %v913_v0  ;;  %821 = vmatpush3.bf16.msra.mxu1 %v914_v1 }
  0xfe   :  { %v315_v18 = vpop.f32.mrf.mxu0  ;;  %v356_v19 = vpop.f32.mrf.mxu1 }
  0xff   :  { %v316_v20 = vadd.f32 %v315_v18, %v108_v14  ;;  %v357_v21 = vadd.f32 %v356_v19, %v116_v15 }
 0x100   :  { %v317_v22 = vpop.f32.mrf.mxu0  ;;  %v358_v23 = vpop.f32.mrf.mxu1 }
 0x101   :  { %v365_v24 = vmax.f32 %v357_v21, 0.0  ;;  %v318_v25 = vadd.f32 %v317_v22, %v112_v16  ;;  %v359_v26 = vadd.f32 %v358_v23, %v120_v17  ;;  %v363_v27 = vmax.f32 %v316_v20, 0.0 }
 0x102   :  { %v319_v28 = vpop.f32.mrf.mxu0  ;;  %v360_v29 = vpop.f32.mrf.mxu1 }
 0x103   :  { %v364_v30 = vmax.f32 %v318_v25, 0.0  ;;  %v366_v31 = vmax.f32 %v359_v26, 0.0  ;;  %v369_v32 = vpack.c.bf16 %v365_v24, %v365_v24  ;;  %v367_v37 = vpack.c.bf16 %v363_v27, %v363_v27 }
 0x104   :  { %v320_v33 = vpop.f32.mrf.mxu0  ;;  %v361_v34 = vpop.f32.mrf.mxu1 }
 0x105   :  { %v368_v35 = vpack.c.bf16 %v364_v30, %v364_v30  ;;  %v370_v36 = vpack.c.bf16 %v366_v31, %v366_v31 }
 0x107   :  { %665 = vmatprep.mubr.bf16.mxu0 %v368_v35  ;;  %705 = vmatprep.mubr.bf16.mxu1 %v370_v36 }
 0x108   :  { %666 = vmatmul.mubr.bf16.vlgmr.msra.gmra.mxu0 %v367_v37  ;;  %706 = vmatmul.mubr.bf16.vlgmr.msra.gmra.mxu1 %v369_v32 }
 0x1c8   :  { %v800_v40 = vpop.f32.mrf.mxu0  ;;  %v822_v41 = vpop.f32.mrf.mxu1 }
 0x1ca   :  { %v801_v43 = vpop.f32.mrf.mxu0  ;;  %v823_v44 = vpop.f32.mrf.mxu1 }
 0x1cb   :  { %v802_v45 = vadd.f32 %v801_v43, %v800_v40  ;;  %v824_v49 = vadd.f32 %v823_v44, %v822_v41 }
 0x1cc   :  { %v803_v46 = vpop.f32.mrf.mxu0  ;;  %v825_v47 = vpop.f32.mrf.mxu1 }
 0x1cd   :  { %v668_v48 = vadd.f32 %v802_v45, %v440_v42 }
 0x1ce   :  { %v804_v50 = vpop.f32.mrf.mxu0  ;;  %v826_v51 = vpop.f32.mrf.mxu1 }
 0x1cf   :  { %v708_v52 = vadd.f32 %v824_v49, %v668_v48 }
 0x1d1   :  { %713 = vst [vmem:[%s1019_s5] sm:$0xff] %v708_v52 }
 0x1d2   :  { %718 = vsyncpa [#allocation3], 1 }
 0x1d3   :  { %719 = vsyncpa [#allocation5], 1 }

</bundles_post_ra>
